<compile_context>
chip_gen: v6e
topology: v6e:2x2x1
jax: 0.10.0
libtpu: 0.0.40
codegen_flags: <defaults>
</compile_context>

<pallas_src>
import functools

import jax
import jax.numpy as jnp
from jax import lax
from jax.experimental import pallas as pl
from jax.experimental.pallas import tpu as pltpu

LANES = 128
SUBLANES = 8
CHUNK = SUBLANES * LANES          # 1024 elements: minimum Pallas-processed unit
STRIP_ROWS = 512                  # in-kernel strip: bounds f32 temporaries to 256 KiB
_LN2 = 0.6931471805599453


def _cdiv(a, b):
    return (a + b - 1) // b


def _chip_config():
    """(max_tile_rows, n_parallel_cores) derived from the local device kind."""
    try:
        kind = jax.devices()[0].device_kind.lower()
    except Exception:  # pragma: no cover - e.g. uninitialised backend
        kind = ""
    is_lite = ("lite" in kind) or ("v5e" in kind) or ("v6e" in kind)
    # v5e has the tightest scoped-VMEM default: cap at 4096 rows (2 MiB / buffer).
    max_tile_rows = 4096 if ("v5" in kind and is_lite) else 8192
    # Leading "parallel" core axis only pays off on megacore / dual-TC chips.
    dual_core = ("v4" in kind) or ("v7" in kind) or ("7x" in kind) or (
        "v5" in kind and not is_lite)
    return max_tile_rows, (2 if dual_core else 1)


TILE_ROWS_MAX, NCORES = _chip_config()


# --------------------------------------------------------------------------
# Pallas kernel: masked partial sums of (p - y)^2 and log(cosh(p - y))
# --------------------------------------------------------------------------
def _logcosh_strip(p, y, m, valid):
    """Partial sums of one (s, 128) strip, folded onto (8, 128) accumulators.

    p, y : (s, 128) float32.
    m    : optional (s, 128) float32 element mask (0/1); `where`, not `*`, so NaN
           labels of masked-out samples are dropped exactly.
    valid: optional (s, 1) bool row mask (ragged-edge / redundant tile handling).
    """
    d = p - y
    masked = False
    if m is not None:
        d = jnp.where(m != 0.0, d, 0.0)
        masked = True
    if valid is not None:
        d = jnp.where(valid, d, 0.0)
        masked = True
    sq = d * d
    a = jnp.abs(d)
    # Stable log-cosh: log(cosh(d)) = |d| + log1p(exp(-2|d|)) - log(2)
    lc = a + jnp.log1p(jnp.exp(-2.0 * a)) - _LN2
    if masked:
        lc = jnp.where(d != 0.0, lc, 0.0)       # exact 0 for masked / padded elements
    s = p.shape[0]
    return (sq.reshape(s // SUBLANES, SUBLANES, LANES).sum(axis=0),
            lc.reshape(s // SUBLANES, SUBLANES, LANES).sum(axis=0))


def _sums_kernel(*refs, rows, tile_rows, steps_per_core, has_mask, needs_edge):
    if has_mask:
        p_ref, y_ref, m_ref, sq_ref, lc_ref = refs
    else:
        p_ref, y_ref, sq_ref, lc_ref = refs
        m_ref = None

    c = pl.program_id(0)              # core split (parallel)
    i = pl.program_id(1)              # reduction steps (arbitrary)

    # Outputs double as per-core accumulators (same block across the i axis).
    @pl.when(i == 0)
    def _init():
        sq_ref[...] = jnp.zeros_like(sq_ref)
        lc_ref[...] = jnp.zeros_like(lc_ref)

    # Unclamped requested block index: detects ragged / redundant tiles.
    block_idx = c * steps_per_core + i
    row_start = block_idx * tile_rows

    n_full_strips = tile_rows // STRIP_ROWS
    rem_rows = tile_rows - n_full_strips * STRIP_ROWS     # static, multiple of 8

    def tile_sums(use_row_mask):
        def strip(r0, nrows):
            p = p_ref[pl.ds(r0, nrows), :].astype(jnp.float32)
            y = y_ref[pl.ds(r0, nrows), :].astype(jnp.float32)
            m = m_ref[pl.ds(r0, nrows), :].astype(jnp.float32) if has_mask else None
            valid = None
            if use_row_mask:
                rid = row_start + r0 + lax.broadcasted_iota(jnp.int32, (nrows, 1), 0)
                valid = rid < rows
            return _logcosh_strip(p, y, m, valid)

        acc = (jnp.zeros((SUBLANES, LANES), jnp.float32),
               jnp.zeros((SUBLANES, LANES), jnp.float32))

        if n_full_strips > 0:
            # Strip-mined reduction: keeps f32 temporaries at strip size instead of
            # materializing full (tile_rows, 128) intermediates in VMEM.
            def body(s, carry):
                a_sq, a_lc = carry
                r0 = pl.multiple_of(s * STRIP_ROWS, STRIP_ROWS)
                d_sq, d_lc = strip(r0, STRIP_ROWS)
                return a_sq + d_sq, a_lc + d_lc
            acc = lax.fori_loop(0, n_full_strips, body, acc)

        if rem_rows:
            d_sq, d_lc = strip(n_full_strips * STRIP_ROWS, rem_rows)
            acc = (acc[0] + d_sq, acc[1] + d_lc)
        return acc

    def accumulate(use_row_mask):
        a_sq, a_lc = tile_sums(use_row_mask)
        sq_ref[...] += a_sq
        lc_ref[...] += a_lc

    if not needs_edge:
        # Every requested tile is full and real: fast path only (no iota masking).
        accumulate(use_row_mask=False)
    else:
        is_live = row_start < rows
        is_full = row_start + tile_rows <= rows

        @pl.when(is_full)
        def _fast():
            accumulate(use_row_mask=False)

        @pl.when(jnp.logical_and(is_live, jnp.logical_not(is_full)))
        def _edge():
            accumulate(use_row_mask=True)
        # Fully-redundant clamped tiles (row_start >= rows) are skipped entirely.


def _pallas_partial_sums(p2, y2, m2):
    """Pallas reduction over a lane-dense (rows, 128) slab; rows % 8 == 0."""
    rows = p2.shape[0]
    tile_rows = min(TILE_ROWS_MAX, rows)
    total_steps = _cdiv(rows, tile_rows)
    ncores = max(1, min(NCORES, total_steps))
    steps_per_core = _cdiv(total_steps, ncores)
    last_block = total_steps - 1
    has_mask = m2 is not None
    needs_edge = (rows % tile_rows != 0) or (ncores * steps_per_core != total_steps)

    def in_map(c, i):
        # Clamp so every DMA origin stays in bounds; redundant clamped tiles are
        # skipped inside the kernel at the scalar level.
        return (jnp.minimum(c * steps_per_core + i, last_block), 0)

    operands = [p2, y2]
    in_specs = [pl.BlockSpec((tile_rows, LANES), in_map),
                pl.BlockSpec((tile_rows, LANES), in_map)]
    if has_mask:
        operands.append(m2)
        in_specs.append(pl.BlockSpec((tile_rows, LANES), in_map))

    out_spec = pl.BlockSpec((None, SUBLANES, LANES), lambda c, i: (c, 0, 0))
    out_shape = jax.ShapeDtypeStruct((ncores, SUBLANES, LANES), jnp.float32)

    # VMEM budget: double-buffered input tiles + strip-sized temporaries + slack.
    tile_bytes = tile_rows * LANES * 4
    vmem_limit = len(operands) * 2 * tile_bytes + 8 * STRIP_ROWS * LANES * 4 + (4 << 20)

    kernel = functools.partial(
        _sums_kernel, rows=rows, tile_rows=tile_rows,
        steps_per_core=steps_per_core, has_mask=has_mask, needs_edge=needs_edge)

    sq_part, lc_part = pl.pallas_call(
        kernel,
        out_shape=(out_shape, out_shape),
        grid_spec=pltpu.PrefetchScalarGridSpec(
            num_scalar_prefetch=0,
            grid=(ncores, steps_per_core),
            in_specs=in_specs,
            out_specs=(out_spec, out_spec)),
        compiler_params=pltpu.CompilerParams(
            dimension_semantics=("parallel", "arbitrary"),
            vmem_limit_bytes=int(vmem_limit)),
    )(*operands)
    return jnp.sum(sq_part), jnp.sum(lc_part)


def _sq_logcosh_sums(p, y, elem_mask=None):
    """Masked sums of (p-y)^2 and log(cosh(p-y)) over all elements of p / y."""
    assert p.shape == y.shape
    n = p.size
    pf = p.reshape(-1)
    yf = y.reshape(-1)
    mf = None if elem_mask is None else elem_mask.reshape(-1).astype(jnp.float32)

    n_main = (n // CHUNK) * CHUNK            # 1024-aligned prefix handled by Pallas
    sum_sq = jnp.float32(0.0)
    sum_lc = jnp.float32(0.0)

    if n_main:
        def prefix(a):
            a = a if n_main == n else a[:n_main]
            return a.reshape(n_main // LANES, LANES)
        s_sq, s_lc = _pallas_partial_sums(
            prefix(pf), prefix(yf), None if mf is None else prefix(mf))
        sum_sq = sum_sq + s_sq
        sum_lc = sum_lc + s_lc

    if n_main < n:
        # <1024-element ragged tail folded with a tiny plain-JAX reduction
        # (keeps the Pallas path pad-free).
        d = pf[n_main:].astype(jnp.float32) - yf[n_main:].astype(jnp.float32)
        if mf is not None:
            d = jnp.where(mf[n_main:] != 0.0, d, 0.0)
        a = jnp.abs(d)
        lc = a + jnp.log1p(jnp.exp(-2.0 * a)) - _LN2
        if mf is not None:
            lc = jnp.where(d != 0.0, lc, 0.0)
        sum_sq = sum_sq + jnp.sum(d * d)
        sum_lc = sum_lc + jnp.sum(lc)
    return sum_sq, sum_lc


def rmse_logcosh(p, y, elem_mask=None, count=None):
    """RMLCosh loss: sqrt(mean((p-y)^2)) + mean(log(cosh(p-y))) over (masked) elems."""
    sum_sq, sum_lc = _sq_logcosh_sums(p, y, elem_mask)
    if count is None:
        count = (jnp.float32(p.size) if elem_mask is None
                 else jnp.sum(elem_mask.astype(jnp.float32)))
    count = jnp.maximum(jnp.asarray(count, jnp.float32), 1.0)   # all-masked guard
    return jnp.sqrt(sum_sq / count) + sum_lc / count


# --------------------------------------------------------------------------
# MultiTaskLossWithNaN forward (emotion_loss_type='BCE',
# personality_loss_type='rmse_logcosh') — fully traced / jittable.
# --------------------------------------------------------------------------
def binarize_with_nan(x, threshold=0.5):
    binary = jnp.where(x > threshold, 1.0, 0.0)
    return jnp.where(jnp.isnan(x), jnp.nan, binary)


def _bce_with_logits_masked(logits, targets, row_mask):
    # TODO(synk): emotion BCE stays in plain JAX — it is a tiny (B, C_emo) op.
    x = logits.astype(jnp.float32)
    z = targets.astype(jnp.float32)
    per = jnp.maximum(x, 0.0) - x * z + jnp.log1p(jnp.exp(-jnp.abs(x)))
    w = row_mask.astype(jnp.float32)[:, None]
    per = jnp.where(w > 0.0, per, 0.0)
    n_valid = jnp.sum(row_mask.astype(jnp.float32))
    count = jnp.maximum(n_valid * logits.shape[-1], 1.0)
    return jnp.sum(per) / count, n_valid


def multi_task_loss_with_nan(outputs, labels,
                             weight_emotion=1.0, weight_personality=1.0):
    # TODO(synk): 'ccc' (module default), 'CE' and the other personality-loss
    # variants are not Pallas-ported; only the 'rmse_logcosh' branch is.
    loss = jnp.float32(0.0)

    pred_emotion = outputs.get("emotion_logits")
    if pred_emotion is not None:
        true_emotion = binarize_with_nan(labels["emotion"], threshold=0.0)
        emo_loss, n_valid_e = _bce_with_logits_masked(
            pred_emotion, true_emotion, labels["valid_emo"])
        loss = loss + weight_emotion * jnp.where(n_valid_e > 0, emo_loss, 0.0)

    pred_personality = outputs.get("personality_scores")
    if pred_personality is not None:
        per_mask = labels["valid_per"]
        n_valid_p = jnp.sum(per_mask.astype(jnp.float32))
        count = n_valid_p * pred_personality.shape[-1]
        # Sample validity folded into the kernel as a streamed element mask (no
        # masked copies of p / y are materialized; NaN labels of invalid samples
        # are dropped in-kernel via `where`).
        # TODO(synk): stream the mask as int8 to shave a further ~12% HBM traffic.
        elem_mask = jnp.broadcast_to(
            per_mask[:, None], pred_personality.shape).astype(jnp.float32)
        per_loss = rmse_logcosh(pred_personality, labels["personality"],
                                elem_mask=elem_mask, count=count)
        loss = loss + weight_personality * jnp.where(n_valid_p > 0, per_loss, 0.0)

    return loss


# --------------------------------------------------------------------------
# Pure-JAX references (eager-only, PyTorch-style boolean indexing)
# --------------------------------------------------------------------------
def _ref_rmse_logcosh(p, y):
    d = p.astype(jnp.float32) - y.astype(jnp.float32)
    return jnp.sqrt(jnp.mean(d * d)) + jnp.mean(jnp.log(jnp.cosh(d)))


def _ref_rmse_logcosh_masked(p, y, mask):
    d = (p.astype(jnp.float32) - y.astype(jnp.float32))[mask]
    return jnp.sqrt(jnp.mean(d * d)) + jnp.mean(jnp.log(jnp.cosh(d)))


def _ref_multi_task(outputs, labels, weight_emotion=1.0, weight_personality=1.0):
    loss = jnp.float32(0.0)
    emo_mask = labels["valid_emo"]
    pred_emotion = outputs.get("emotion_logits")
    if pred_emotion is not None and bool(jnp.any(emo_mask)):
        x = pred_emotion[emo_mask].astype(jnp.float32)
        t = binarize_with_nan(labels["emotion"][emo_mask], threshold=0.0)
        per = jnp.maximum(x, 0.0) - x * t + jnp.log1p(jnp.exp(-jnp.abs(x)))
        loss = loss + weight_emotion * jnp.mean(per)
    per_mask = labels["valid_per"]
    pred_personality = outputs.get("personality_scores")
    if pred_personality is not None and bool(jnp.any(per_mask)):
        loss = loss + weight_personality * _ref_rmse_logcosh(
            pred_personality[per_mask], labels["personality"][per_mask])
    return loss


if __name__ == "__main__":
    keys = jax.random.split(jax.random.PRNGKey(0), 10)

    # ---- 1) unmasked Pallas path, conv-sized tensor (2048 elems, single tile) ----
    p1 = jax.random.normal(keys[0], (2, 4, 16, 16), dtype=jnp.float32)
    y1 = jax.random.normal(keys[1], (2, 4, 16, 16), dtype=jnp.float32)
    got1 = jax.block_until_ready(rmse_logcosh(p1, y1))
    want1 = _ref_rmse_logcosh(p1, y1)
    assert jnp.allclose(got1, want1, rtol=1e-5, atol=1e-5), (got1, want1)

    # ---- 2) masked multi-tile path: ragged last tile + fast/edge split + tail ----
    p2 = jax.random.normal(keys[2], (1100, 1000), dtype=jnp.float32)
    y2 = jax.random.normal(keys[3], (1100, 1000), dtype=jnp.float32)
    m2 = jax.random.uniform(keys[4], (1100, 1000)) > 0.3
    got2 = jax.block_until_ready(rmse_logcosh(p2, y2, elem_mask=m2))
    want2 = _ref_rmse_logcosh_masked(p2, y2, m2)
    assert jnp.allclose(got2, want2, rtol=5e-4, atol=5e-4), (got2, want2)

    # ---- 3) MultiTaskLossWithNaN forward, small batch (module-sized shapes) ----
    B, C_EMO, TRAITS = 8, 6, 5
    outputs = {
        "emotion_logits": jax.random.normal(keys[5], (B, C_EMO), dtype=jnp.float32),
        "personality_scores": jax.random.normal(keys[6], (B, TRAITS), dtype=jnp.float32),
    }
    personality_true = jax.random.normal(jax.random.PRNGKey(1), (B, TRAITS),
                                         dtype=jnp.float32)
    personality_true = personality_true.at[2].set(jnp.nan)   # NaN on a masked sample
    labels = {
        "emotion": jax.random.normal(keys[7], (B, C_EMO), dtype=jnp.float32),
        "valid_emo": jnp.array([1, 1, 0, 1, 0, 1, 1, 0], dtype=bool),
        "personality": personality_true,
        "valid_per": jnp.array([1, 0, 0, 1, 1, 1, 0, 1], dtype=bool),
    }
    got3 = jax.block_until_ready(multi_task_loss_with_nan(outputs, labels))
    want3 = _ref_multi_task(outputs, labels)
    assert jnp.allclose(got3, want3, rtol=1e-5, atol=1e-5), (got3, want3)

    # ---- 4) larger batch: masked Pallas prefix + plain-JAX tail, and jit check ----
    B2 = 256
    outputs2 = {
        "emotion_logits": jax.random.normal(keys[8], (B2, C_EMO), dtype=jnp.float32),
        "personality_scores": jax.random.normal(keys[9], (B2, TRAITS),
                                                dtype=jnp.float32),
    }
    per2 = jax.random.normal(jax.random.PRNGKey(2), (B2, TRAITS), dtype=jnp.float32)
    valid_per2 = jax.random.uniform(jax.random.PRNGKey(12), (B2,)) > 0.25
    valid_per2 = valid_per2.at[3].set(False).at[250].set(False)
    per2 = per2.at[3].set(jnp.nan).at[250].set(jnp.nan)      # NaN only where invalid
    labels2 = {
        "emotion": jax.random.normal(jax.random.PRNGKey(3), (B2, C_EMO),
                                     dtype=jnp.float32),
        "valid_emo": jax.random.uniform(jax.random.PRNGKey(13), (B2,)) > 0.2,
        "personality": per2,
        "valid_per": valid_per2,
    }
    got4 = jax.block_until_ready(multi_task_loss_with_nan(outputs2, labels2))
    want4 = _ref_multi_task(outputs2, labels2)
    assert jnp.allclose(got4, want4, rtol=1e-5, atol=1e-5), (got4, want4)

    # End-to-end jit (previous version could not be jitted due to bool() syncs).
    got4_jit = jax.block_until_ready(
        jax.jit(multi_task_loss_with_nan)(outputs2, labels2))
    assert jnp.allclose(got4_jit, want4, rtol=1e-5, atol=1e-5), (got4_jit, want4)

    print("KERNEL_OK")
</pallas_src>

<mosaic_0001>
module attributes {stable_mosaic.version = 11 : i64} {
  func.func @_sums_kernel(%arg0: i32, %arg1: i32, %arg2: memref<16x128xf32, #tpu.memory_space<vmem>>, %arg3: memref<16x128xf32, #tpu.memory_space<vmem>>, %arg4: memref<1x8x128xf32, #tpu.memory_space<vmem>>, %arg5: memref<1x8x128xf32, #tpu.memory_space<vmem>>) attributes {dimension_semantics = [#tpu.dimension_semantics<parallel>, #tpu.dimension_semantics<arbitrary>], iteration_bounds = array<i64: 1, 1>, scalar_prefetch = 0 : i64, scratch_operands = 0 : i64, tpu.core_type = #tpu.core_type<tc>, window_params = [{transform_indices = @transform_0, window_bounds = array<i64: 16, 128>}, {transform_indices = @transform_1, window_bounds = array<i64: 16, 128>}, {transform_indices = @transform_2, window_bounds = array<i64: 1, 8, 128>}, {transform_indices = @transform_3, window_bounds = array<i64: 1, 8, 128>}]} {
    %c0_i32 = arith.constant 0 : i32
    %0 = arith.cmpi eq, %arg1, %c0_i32 : i32
    %1 = arith.extui %0 : i1 to i32
    %c0_i32_0 = arith.constant 0 : i32
    %2 = arith.cmpi ne, %1, %c0_i32_0 : i32
    scf.if %2 {
      %cst_21 = arith.constant 0.000000e+00 : f32
      %35 = vector.broadcast %cst_21 : f32 to vector<8x128xf32>
      %c0_22 = arith.constant 0 : index
      %c0_23 = arith.constant 0 : index
      %c0_24 = arith.constant 0 : index
      %36 = vector.load %arg4[%c0_22, %c0_23, %c0_24] : memref<1x8x128xf32, #tpu.memory_space<vmem>>, vector<1x8x128xf32>
      %37 = vector.shape_cast %36 : vector<1x8x128xf32> to vector<8x128xf32>
      %38 = vector.shape_cast %35 : vector<8x128xf32> to vector<1x8x128xf32>
      tpu.vector_store %arg4[%c0_22, %c0_23, %c0_24], %38 {strides = array<i32>} : memref<1x8x128xf32, #tpu.memory_space<vmem>>, vector<1x8x128xf32>,
      %cst_25 = arith.constant 0.000000e+00 : f32
      %39 = vector.broadcast %cst_25 : f32 to vector<8x128xf32>
      %c0_26 = arith.constant 0 : index
      %c0_27 = arith.constant 0 : index
      %c0_28 = arith.constant 0 : index
      %40 = vector.load %arg5[%c0_26, %c0_27, %c0_28] : memref<1x8x128xf32, #tpu.memory_space<vmem>>, vector<1x8x128xf32>
      %41 = vector.shape_cast %40 : vector<1x8x128xf32> to vector<8x128xf32>
      %42 = vector.shape_cast %39 : vector<8x128xf32> to vector<1x8x128xf32>
      tpu.vector_store %arg5[%c0_26, %c0_27, %c0_28], %42 {strides = array<i32>} : memref<1x8x128xf32, #tpu.memory_space<vmem>>, vector<1x8x128xf32>,
    } else {
    }
    %cst = arith.constant 0.000000e+00 : f32
    %3 = vector.broadcast %cst : f32 to vector<8x128xf32>
    %cst_1 = arith.constant 0.000000e+00 : f32
    %4 = vector.broadcast %cst_1 : f32 to vector<8x128xf32>
    %c0 = arith.constant 0 : index
    %c0_2 = arith.constant 0 : index
    %5 = vector.load %arg2[%c0, %c0_2] : memref<16x128xf32, #tpu.memory_space<vmem>>, vector<16x128xf32>
    %c0_3 = arith.constant 0 : index
    %c0_4 = arith.constant 0 : index
    %6 = vector.load %arg3[%c0_3, %c0_4] : memref<16x128xf32, #tpu.memory_space<vmem>>, vector<16x128xf32>
    %7 = arith.subf %5, %6 : vector<16x128xf32>
    %8 = arith.mulf %7, %7 : vector<16x128xf32>
    %9 = math.absf %7 : vector<16x128xf32>
    %cst_5 = arith.constant -2.000000e+00 : f32
    %10 = vector.broadcast %cst_5 : f32 to vector<16x128xf32>
    %11 = arith.mulf %10, %9 : vector<16x128xf32>
    %12 = math.exp %11 : vector<16x128xf32>
    %13 = math.log1p %12 : vector<16x128xf32>
    %14 = arith.addf %9, %13 : vector<16x128xf32>
    %cst_6 = arith.constant 0.693147182 : f32
    %15 = vector.broadcast %cst_6 : f32 to vector<16x128xf32>
    %16 = arith.subf %14, %15 : vector<16x128xf32>
    %17 = vector.shape_cast %8 : vector<16x128xf32> to vector<2x8x128xf32>
    %cst_7 = arith.constant dense<0.000000e+00> : vector<8x128xf32>
    %18 = vector.multi_reduction <add>, %17, %cst_7 [0] : vector<2x8x128xf32> to vector<8x128xf32>
    %19 = vector.shape_cast %16 : vector<16x128xf32> to vector<2x8x128xf32>
    %cst_8 = arith.constant dense<0.000000e+00> : vector<8x128xf32>
    %20 = vector.multi_reduction <add>, %19, %cst_8 [0] : vector<2x8x128xf32> to vector<8x128xf32>
    %21 = arith.addf %3, %18 : vector<8x128xf32>
    %22 = arith.addf %4, %20 : vector<8x128xf32>
    %c0_9 = arith.constant 0 : index
    %c0_10 = arith.constant 0 : index
    %c0_11 = arith.constant 0 : index
    %23 = vector.load %arg4[%c0_9, %c0_10, %c0_11] : memref<1x8x128xf32, #tpu.memory_space<vmem>>, vector<1x8x128xf32>
    %24 = vector.shape_cast %23 : vector<1x8x128xf32> to vector<8x128xf32>
    %25 = arith.addf %24, %21 : vector<8x128xf32>
    %c0_12 = arith.constant 0 : index
    %c0_13 = arith.constant 0 : index
    %c0_14 = arith.constant 0 : index
    %26 = vector.load %arg4[%c0_12, %c0_13, %c0_14] : memref<1x8x128xf32, #tpu.memory_space<vmem>>, vector<1x8x128xf32>
    %27 = vector.shape_cast %26 : vector<1x8x128xf32> to vector<8x128xf32>
    %28 = vector.shape_cast %25 : vector<8x128xf32> to vector<1x8x128xf32>
    tpu.vector_store %arg4[%c0_12, %c0_13, %c0_14], %28 {strides = array<i32>} : memref<1x8x128xf32, #tpu.memory_space<vmem>>, vector<1x8x128xf32>,
    %c0_15 = arith.constant 0 : index
    %c0_16 = arith.constant 0 : index
    %c0_17 = arith.constant 0 : index
    %29 = vector.load %arg5[%c0_15, %c0_16, %c0_17] : memref<1x8x128xf32, #tpu.memory_space<vmem>>, vector<1x8x128xf32>
    %30 = vector.shape_cast %29 : vector<1x8x128xf32> to vector<8x128xf32>
    %31 = arith.addf %30, %22 : vector<8x128xf32>
    %c0_18 = arith.constant 0 : index
    %c0_19 = arith.constant 0 : index
    %c0_20 = arith.constant 0 : index
    %32 = vector.load %arg5[%c0_18, %c0_19, %c0_20] : memref<1x8x128xf32, #tpu.memory_space<vmem>>, vector<1x8x128xf32>
    %33 = vector.shape_cast %32 : vector<1x8x128xf32> to vector<8x128xf32>
    %34 = vector.shape_cast %31 : vector<8x128xf32> to vector<1x8x128xf32>
    tpu.vector_store %arg5[%c0_18, %c0_19, %c0_20], %34 {strides = array<i32>} : memref<1x8x128xf32, #tpu.memory_space<vmem>>, vector<1x8x128xf32>,
    return
  }
  func.func @transform_0(%arg0: i32, %arg1: i32) -> (i32, i32) {
    %c1_i32 = arith.constant 1 : i32
    %0 = arith.muli %arg0, %c1_i32 : i32
    %1 = arith.addi %0, %arg1 : i32
    %c0_i32 = arith.constant 0 : i32
    %2 = arith.minsi %1, %c0_i32 : i32
    %c0_i32_0 = arith.constant 0 : i32
    %c0_i32_1 = arith.constant 0 : i32
    return %2, %c0_i32_0 : i32, i32
  }
  func.func @transform_1(%arg0: i32, %arg1: i32) -> (i32, i32) {
    %c1_i32 = arith.constant 1 : i32
    %0 = arith.muli %arg0, %c1_i32 : i32
    %1 = arith.addi %0, %arg1 : i32
    %c0_i32 = arith.constant 0 : i32
    %2 = arith.minsi %1, %c0_i32 : i32
    %c0_i32_0 = arith.constant 0 : i32
    %c0_i32_1 = arith.constant 0 : i32
    return %2, %c0_i32_0 : i32, i32
  }
  func.func @transform_2(%arg0: i32, %arg1: i32) -> (i32, i32, i32) {
    %c0_i32 = arith.constant 0 : i32
    %c0_i32_0 = arith.constant 0 : i32
    %c0_i32_1 = arith.constant 0 : i32
    return %arg0, %c0_i32, %c0_i32_0 : i32, i32, i32
  }
  func.func @transform_3(%arg0: i32, %arg1: i32) -> (i32, i32, i32) {
    %c0_i32 = arith.constant 0 : i32
    %c0_i32_0 = arith.constant 0 : i32
    %c0_i32_1 = arith.constant 0 : i32
    return %arg0, %c0_i32, %c0_i32_0 : i32, i32, i32
  }
}

</mosaic_0001>

<bundles_post_ra>
// kernel: tpu_custom_call.1
= control target key start
LH: loop header
LB: loop body
LE: loop exit
PB: predicated region body
PF: predicated region fallthrough
CT: control target
= control target key end

     0   :  { %9 = vsyncpa [#allocation3], 0  ;;  %s294_s0 = inlined_call_operand.hbm [shape: f32[16,128], index: 0, kind: input, shape index: {}]   ;;  %s295_s1 = inlined_call_operand.hbm [shape: f32[16,128], index: 1, kind: input, shape index: {}]   ;;  %s296_s2 = inlined_call_operand.hbm [shape: f32[1,8,128], index: 2, kind: output, shape index: {0}]   ;;  %s297_s3 = inlined_call_operand.hbm [shape: f32[1,8,128], index: 3, kind: output, shape index: {1}]  }
   0x1   :  { %10 = vsyncpa [#allocation6], 0 }
   0x2   :  { %11 = vsyncpa [#allocation4], 0 }
   0x3   :  { %12 = vsyncpa [#allocation9], 0  ;;  %s256_s12 = smov [#allocation2]  }
   0x4   :  { %s24_s13 = sshll.u32 %s256_s12, 4  ;;  %s25_s13 = int_to_ptr.vmem [resolvable:$true] %s24_s13 }
   0x5   :  { %s176_s14 = scalar_lea.vmem %s25_s13, 256  ;;  %p181_p1 = scmp.lt.s32.totalorder %s25_s13, %s25_s13 }
   0x6   :  { %p177_p0 = scmp.ne.s32.totalorder %s25_s13, %s176_s14  ;;  %p182_p2 = scmp.lt.s32.totalorder %s176_s14, %s176_s14 }
   0x8   :  { %p183_p3 = por %p182_p2, %p181_p1 }
   0xa   :  { %p184_p4 = pnand %p183_p3, %p177_p0 }
   0xc   :  { %187 = shalt.err (!%p184_p4)
}
   0xd   :  { %s257_s15 = smov 128   ;;  %s258_s16 = smov 8  }
   0xe   :  { %30 = dma.hbm_to_vmem [thread:$0]  %s294_s0, 256, %s25_s13, [#allocation3], %s257_s15, %s257_s15, %s258_s16  }
   0xf   :  { %s259_s19 = smov [#allocation5]  }
  0x10   :  { %s42_s20 = sshll.u32 %s259_s19, 4  ;;  %s43_s20 = int_to_ptr.vmem [resolvable:$true] %s42_s20 }
  0x11   :  { %s196_s21 = scalar_lea.vmem %s43_s20, 256  ;;  %p201_p6 = scmp.lt.s32.totalorder %s43_s20, %s43_s20 }
  0x12   :  { %p197_p5 = scmp.ne.s32.totalorder %s43_s20, %s196_s21  ;;  %p202_p7 = scmp.lt.s32.totalorder %s196_s21, %s196_s21 }
  0x14   :  { %p203_p8 = por %p202_p7, %p201_p6 }
  0x16   :  { %p204_p9 = pnand %p203_p8, %p197_p5 }
  0x18   :  { %207 = shalt.err (!%p204_p9)
}
  0x19   :  { %48 = dma.hbm_to_vmem [thread:$0]  %s295_s1, 256, %s43_s20, [#allocation6], %s257_s15, %s257_s15, %s258_s16  }
  0x1a   :  { %248 = dma.done.wait [#allocation3], 256  }
  0x1b   :  { %249 = vsyncadd [#allocation3], 4294967040 }
  0x1c   :  { %250 = dma.done.wait [#allocation6], 256  }
  0x1d   :  { %251 = vsyncadd [#allocation6], 4294967040  ;;  %v69_v0 = vld [vmem:[#allocation2] sm:$0xff]  ;;  %v70_v1 = vld [vmem:[#allocation2 + $0x8] sm:$0xff]  ;;  %s260_s0 = smov [#allocation7]  }
  0x1e   :  { %v71_v2 = vld [vmem:[#allocation5] sm:$0xff]  ;;  %v72_v3 = vld [vmem:[#allocation5 + $0x8] sm:$0xff]  ;;  %s123_s24 = sshll.u32 %s260_s0, 4  ;;  %s124_s24 = int_to_ptr.vmem [resolvable:$true] %s123_s24 }
  0x1f   :  { %v73_v4 = vsub.f32 %v69_v0, %v71_v2  ;;  %v74_v5 = vsub.f32 %v70_v1, %v72_v3  ;;  %s208_s1 = scalar_lea.vmem %s124_s24, 128  ;;  %p213_p11 = scmp.lt.s32.totalorder %s124_s24, %s124_s24 }
  0x20   :  { %p209_p10 = scmp.ne.s32.totalorder %s124_s24, %s208_s1  ;;  %p214_p12 = scmp.lt.s32.totalorder %s208_s1, %s208_s1 }
  0x21   :  { %v75_v6 = vmul.f32 %v73_v4, %v73_v4  ;;  %v77_v7 = vand.u32 2147483647, %v73_v4  ;;  %v76_v8 = vmul.f32 %v74_v5, %v74_v5  ;;  %v78_v9 = vand.u32 2147483647, %v74_v5 }
  0x22   :  { %p215_p13 = por %p214_p12, %p213_p11 }
  0x23   :  { %v79_v10 = vmul.f32 -2.0, %v77_v7  ;;  %v107_v11 = vadd.f32 %v76_v8, %v75_v6  ;;  %v80_v12 = vmul.f32 -2.0, %v78_v9 }
  0x24   :  { %p216_p0 = pnand %p215_p13, %p209_p10 }
  0x25   :  { %v81_v13 = vmul.f32 1.442695, %v79_v10  ;;  %v83_v14 = vmul.f32 1.442695, %v80_v12  ;;  %113 = vst [vmem:[#allocation7] sm:$0xff] %v107_v11 }
  0x27   :  { %160 = vpow2.f32 %v81_v13 }
  0x28   :  { %162 = vpow2.f32 %v83_v14 }
  0x29   :  { %219 = shalt.err (!%p216_p0)
}
  0x2a   :  { %126 = dma.vmem_to_hbm [thread:$0]  %s124_s24, 128, %s296_s2, [#allocation4]  }
  0x2b   :  { %s261_s2 = smov [#allocation8]  }
  0x2c   :  { %s133_s27 = sshll.u32 %s261_s2, 4  ;;  %s134_s27 = int_to_ptr.vmem [resolvable:$true] %s133_s27 }
  0x2d   :  { %s228_s28 = scalar_lea.vmem %s134_s27, 128  ;;  %p233_p2 = scmp.lt.s32.totalorder %s134_s27, %s134_s27 }
  0x2e   :  { %p229_p1 = scmp.ne.s32.totalorder %s134_s27, %s228_s28  ;;  %p234_p3 = scmp.lt.s32.totalorder %s228_s28, %s228_s28 }
  0x30   :  { %p235_p4 = por %p234_p3, %p233_p2 }
  0x32   :  { %p236_p5 = pnand %p235_p4, %p229_p1 }
  0x34   :  { %v161_v15 = vpop.eup %160 }
  0x35   :  { %v163_v16 = vpop.eup %162  ;;  %v85_v17 = vadd.f32 1.0, %v161_v15  ;;  %v88_v19 = vmul.f32 -0.5, %v161_v15  ;;  %v91_v22 = vand.u32 2147483647, %v161_v15 }
  0x36   :  { %v94_v18 = vadd.f32 1.0, %v163_v16  ;;  %v97_v20 = vmul.f32 -0.5, %v163_v16  ;;  %v100_v24 = vand.u32 2147483647, %v163_v16 }
  0x37   :  { %164 = vlog2.f32 %v85_v17  ;;  %v89_v21 = vadd.f32 1.0, %v88_v19  ;;  %vm92_vm0 = vcmp.lt.f32.partialorder %v91_v22, 0.0004427343 }
  0x38   :  { %166 = vlog2.f32 %v94_v18  ;;  %v98_v23 = vadd.f32 1.0, %v97_v20  ;;  %vm101_vm1 = vcmp.lt.f32.partialorder %v100_v24, 0.0004427343 }
  0x39   :  { %v90_v25 = vmul.f32 %v161_v15, %v89_v21 }
  0x3a   :  { %v99_v27 = vmul.f32 %v163_v16, %v98_v23 }
  0x44   :  { %v165_v26 = vpop.eup %164 }
  0x45   :  { %v167_v28 = vpop.eup %166  ;;  %v87_v29 = vmul.f32 0.6931472, %v165_v26 }
  0x46   :  { %v96_v30 = vmul.f32 0.6931472, %v167_v28 }
  0x47   :  { %v93_v31 = vsel %vm92_vm0, %v90_v25, %v87_v29 }
  0x48   :  { %v102_v32 = vsel %vm101_vm1, %v99_v27, %v96_v30  ;;  %v103_v33 = vadd.f32 %v93_v31, %v77_v7 }
  0x49   :  { %v104_v34 = vadd.f32 %v102_v32, %v78_v9 }
  0x4a   :  { %v151_v35 = vadd.f32 -0.6931472, %v103_v33 }
  0x4b   :  { %v152_v36 = vadd.f32 -0.6931472, %v104_v34 }
  0x4d   :  { %v108_v37 = vadd.f32 %v152_v36, %v151_v35 }
  0x4f   :  { %116 = vst [vmem:[#allocation8] sm:$0xff] %v108_v37 }
  0x50   :  { %239 = shalt.err (!%p236_p5)
}
  0x51   :  { %136 = dma.vmem_to_hbm [thread:$0]  %s134_s27, 128, %s297_s3, [#allocation9]  }
  0x52   :  { %252 = dma.done.wait [#allocation4], 128  }
  0x53   :  { %253 = vsyncadd [#allocation4], 4294967168 }
  0x54   :  { %254 = dma.done.wait [#allocation9], 128  }
  0x55   :  { %255 = vsyncadd [#allocation9], 4294967168 }
  0x56   :  { %143 = vsyncpa [#allocation3], 1 }
  0x57   :  { %144 = vsyncpa [#allocation6], 1 }
  0x58   :  { %145 = vsyncpa [#allocation4], 1 }
  0x59   :  { %146 = vsyncpa [#allocation9], 1 }

</bundles_post_ra>
